<compile_context>
chip_gen: v7x
topology: tpu7x:2x2x1
jax: 0.10.0
libtpu: 0.0.40
codegen_flags: <defaults>
</compile_context>

<pallas_src>
import jax
import jax.numpy as jnp
from jax.experimental import pallas as pl
from jax.experimental.pallas import tpu as pltpu


def _round_up(v, m):
    return ((v + m - 1) // m) * m


def _linear_kernel(x_ref, w_ref, b_ref, o_ref):
    # x_ref : [TB, K]  activation tile
    # w_ref : [K, N]   weight, pre-transposed, VMEM-resident across grid steps
    # b_ref : [1, N]   bias
    # o_ref : [TB, N]  output tile
    acc = jnp.dot(x_ref[...], w_ref[...], preferred_element_type=jnp.float32)
    o_ref[...] = (acc + b_ref[...]).astype(o_ref.dtype)


def prepare_params(weight, bias):
    """One-time parameter prep (call at init time, not per forward).

    weight: [N, K] (PyTorch nn.Linear layout) -> [K, N] lane-dense
    bias:   [N]                               -> [1, N] (2-D for vreg layout)
    """
    return weight.T, bias.reshape(1, -1)


# Below this many rows, skip tiling entirely: one block, everything resident.
_SINGLE_BLOCK_MAX_ROWS = 2048
# Conservative double-buffered x+out VMEM budget; fits v5e's 16 MiB default
# scoped VMEM and leaves headroom on v6e/v7x (32 MiB scoped default).
_VMEM_BUDGET_BYTES = 12 * 1024 * 1024


def _pick_batch_tile(B, K, N, itemsize):
    # Per-row double-buffered footprint of the streamed arrays (x block + out block).
    per_row = 2 * (K + N) * itemsize
    tb_cap = max(8, (_VMEM_BUDGET_BYTES // per_row) // 8 * 8)
    tb_ideal = min(tb_cap, 8192)
    # Even number of blocks (>=2) so v7x's 2 TensorCores share the parallel axis.
    nb = max(2, pl.cdiv(B, tb_ideal))
    if nb % 2:
        nb += 1
    tb = _round_up(pl.cdiv(B, nb), 8)
    return min(tb, tb_cap)


def net_forward(x, w_t, b2):
    """Pallas equivalent of Net.forward: o = x @ weight.T + bias.

    x   : [B, K]
    w_t : [K, N]  pre-transposed weight (see prepare_params)
    b2  : [1, N]  bias
    """
    B, K = x.shape
    N = w_t.shape[1]

    if B <= _SINGLE_BLOCK_MAX_ROWS:
        # Single whole-array block: no padding, no slicing, no per-step overhead.
        return pl.pallas_call(
            _linear_kernel,
            out_shape=jax.ShapeDtypeStruct((B, N), x.dtype),
            grid=(1,),
            in_specs=[
                pl.BlockSpec((B, K), lambda i: (0, 0)),
                pl.BlockSpec((K, N), lambda i: (0, 0)),
                pl.BlockSpec((1, N), lambda i: (0, 0)),
            ],
            out_specs=pl.BlockSpec((B, N), lambda i: (0, 0)),
        )(x, w_t, b2)

    TB = _pick_batch_tile(B, K, N, x.dtype.itemsize)
    grid = (pl.cdiv(B, TB),)  # trailing partial block is masked; x is NOT padded
    return pl.pallas_call(
        _linear_kernel,
        out_shape=jax.ShapeDtypeStruct((B, N), x.dtype),
        grid=grid,
        in_specs=[
            # x: streamed along the batch axis (double-buffered by BlockSpec).
            pl.BlockSpec((TB, K), lambda i: (i, 0)),
            # W, b: constant index -> stay VMEM-resident across grid steps.
            pl.BlockSpec((K, N), lambda i: (0, 0)),
            pl.BlockSpec((1, N), lambda i: (0, 0)),
        ],
        out_specs=pl.BlockSpec((TB, N), lambda i: (i, 0)),
        compiler_params=pltpu.CompilerParams(
            dimension_semantics=("parallel",),
        ),
    )(x, w_t, b2)


if __name__ == "__main__":
    # Small deterministic shapes consistent with the module:
    # batch=8 samples, num_input=32 features, num_output=16.
    batch, num_input, num_output = 8, 32, 16

    key = jax.random.PRNGKey(0)
    kx, kw, kb = jax.random.split(key, 3)

    x = jax.random.normal(kx, (batch, num_input), dtype=jnp.float32)
    # Deterministic parameter init (mimics nn.Linear uniform(-1/sqrt(in), 1/sqrt(in)))
    bound = 1.0 / jnp.sqrt(jnp.float32(num_input))
    weight = jax.random.uniform(kw, (num_output, num_input),
                                minval=-bound, maxval=bound, dtype=jnp.float32)
    bias = jax.random.uniform(kb, (num_output,),
                              minval=-bound, maxval=bound, dtype=jnp.float32)

    # One-time parameter prep (outside the hot path).
    w_t, b2 = prepare_params(weight, bias)

    out = net_forward(x, w_t, b2)
    out = jax.block_until_ready(out)

    # Reference check in plain JAX.
    ref = x @ weight.T + bias
    assert out.shape == (batch, num_output)
    assert jnp.allclose(out, ref, atol=1e-5, rtol=1e-5)

    print("KERNEL_OK")
</pallas_src>

<mosaic_0001>
module attributes {stable_mosaic.version = 11 : i64} {
  func.func @_linear_kernel(%arg0: i32, %arg1: memref<8x32xf32, #tpu.memory_space<vmem>>, %arg2: memref<32x16xf32, #tpu.memory_space<vmem>>, %arg3: memref<1x16xf32, #tpu.memory_space<vmem>>, %arg4: memref<8x16xf32, #tpu.memory_space<vmem>>) attributes {dimension_semantics = [#tpu.dimension_semantics<arbitrary>], iteration_bounds = array<i64: 1>, scalar_prefetch = 0 : i64, scratch_operands = 0 : i64, tpu.core_type = #tpu.core_type<tc>, window_params = [{pipeline_mode = #tpu.pipeline_mode<synchronous>, transform_indices = @transform_0, window_bounds = array<i64: 8, 32>}, {pipeline_mode = #tpu.pipeline_mode<synchronous>, transform_indices = @transform_1, window_bounds = array<i64: 32, 16>}, {pipeline_mode = #tpu.pipeline_mode<synchronous>, transform_indices = @transform_2, window_bounds = array<i64: 1, 16>}, {pipeline_mode = #tpu.pipeline_mode<synchronous>, transform_indices = @transform_3, window_bounds = array<i64: 8, 16>}]} {
    %c0 = arith.constant 0 : index
    %c0_0 = arith.constant 0 : index
    %0 = vector.load %arg1[%c0, %c0_0] : memref<8x32xf32, #tpu.memory_space<vmem>>, vector<8x32xf32>
    %c0_1 = arith.constant 0 : index
    %c0_2 = arith.constant 0 : index
    %1 = vector.load %arg2[%c0_1, %c0_2] : memref<32x16xf32, #tpu.memory_space<vmem>>, vector<32x16xf32>
    %cst = arith.constant dense<0.000000e+00> : vector<8x16xf32>
    %2 = tpu.matmul %0, %1, %cst {dimension_numbers = #tpu.dot_dimension_numbers<[1], [0], [0], [1], [0, 0, 1, 1], [], []>} : vector<8x32xf32>, vector<32x16xf32>, vector<8x16xf32> -> vector<8x16xf32>
    %c0_3 = arith.constant 0 : index
    %c0_4 = arith.constant 0 : index
    %3 = vector.load %arg3[%c0_3, %c0_4] : memref<1x16xf32, #tpu.memory_space<vmem>>, vector<1x16xf32>
    %4 = vector.broadcast %3 : vector<1x16xf32> to vector<8x16xf32>
    %5 = arith.addf %2, %4 : vector<8x16xf32>
    %c0_5 = arith.constant 0 : index
    %c0_6 = arith.constant 0 : index
    %6 = vector.load %arg4[%c0_5, %c0_6] : memref<8x16xf32, #tpu.memory_space<vmem>>, vector<8x16xf32>
    tpu.vector_store %arg4[%c0_5, %c0_6], %5 {strides = array<i32>} : memref<8x16xf32, #tpu.memory_space<vmem>>, vector<8x16xf32>,
    return
  }
  func.func @transform_0(%arg0: i32) -> (i32, i32) {
    %c0_i32 = arith.constant 0 : i32
    %c0_i32_0 = arith.constant 0 : i32
    %c0_i32_1 = arith.constant 0 : i32
    return %c0_i32, %c0_i32_0 : i32, i32
  }
  func.func @transform_1(%arg0: i32) -> (i32, i32) {
    %c0_i32 = arith.constant 0 : i32
    %c0_i32_0 = arith.constant 0 : i32
    %c0_i32_1 = arith.constant 0 : i32
    return %c0_i32, %c0_i32_0 : i32, i32
  }
  func.func @transform_2(%arg0: i32) -> (i32, i32) {
    %c0_i32 = arith.constant 0 : i32
    %c0_i32_0 = arith.constant 0 : i32
    %c0_i32_1 = arith.constant 0 : i32
    return %c0_i32, %c0_i32_0 : i32, i32
  }
  func.func @transform_3(%arg0: i32) -> (i32, i32) {
    %c0_i32 = arith.constant 0 : i32
    %c0_i32_0 = arith.constant 0 : i32
    %c0_i32_1 = arith.constant 0 : i32
    return %c0_i32, %c0_i32_0 : i32, i32
  }
}

</mosaic_0001>

<bundles_post_ra>
// kernel: tpu_custom_call.1
= control target key start
LH: loop header
LB: loop body
LE: loop exit
PB: predicated region body
PF: predicated region fallthrough
CT: control target
= control target key end

     0   :  { %v169_v3 = vmov 0.0|0.0   ;;  %vm170_vm0 = vmmov 0   ;;  %v171_v6 = vmov 0.0   ;;  %s223_s0 = inlined_call_operand.vmem [shape: f32[8,32], index: 0, kind: input, shape index: {}]   ;;  %s224_s1 = inlined_call_operand.vmem [shape: f32[32,16], index: 1, kind: input, shape index: {}]   ;;  %s225_s2 = inlined_call_operand.vmem [shape: f32[1,16], index: 2, kind: input, shape index: {}]   ;;  %s226_s3 = inlined_call_operand.hbm [shape: f32[8,16], index: 3, kind: output, shape index: {}]  }
   0x1   :  { %v16_v0 = vld [vmem:[%s224_s1] sm:$0xff]  ;;  %v17_v1 = vld [vmem:[%s224_s1 + $0x8] sm:$0xff]  ;;  %v18_v2 = vld [vmem:[%s224_s1 + $0x10] sm:$0xff]  ;;  %135 = vmatprep.subr.bf16.mxu0 %v169_v3  ;;  %132 = vmatprep.mubr.msk.f32.mxu0 %vm170_vm0, %v171_v6 }
   0x2   :  { %v136_v4 = vpack.c.bf16 %v17_v1, %v16_v0  ;;  %v19_v5 = vld [vmem:[%s224_s1 + $0x18] sm:$0xff] }
   0x3   :  { %8 = vsyncpa [#allocation3], 0  ;;  %v139_v7 = vpack.c.bf16 %v19_v5, %v18_v2  ;;  %v15_v8 = vld [vmem:[%s223_s0] sm:$0xff]  ;;  %vm27_vm1 = vcmask 261120   ;;  %s172_s24 = smov [#allocation2]   ;;  %vm101_vm2 = vcmask 130048  }
   0x4   :  { %137 = vmatpush3.bf16.msra.mxu0 %v136_v4  ;;  %v117_v9 = vld [vmem:[%s225_s2] ss:$0 sm:$0xff]  ;;  %s109_s1 = sshll.u32 %s172_s24, 4  ;;  %s110_s1 = int_to_ptr.vmem [resolvable:$true] %s109_s1 }
   0x5   :  { %138 = vmatprep.subr.bf16.mxu0 %v169_v3  ;;  %s145_s25 = scalar_lea.vmem %s110_s1, 128  ;;  %p150_p1 = scmp.lt.s32.totalorder %s110_s1, %s110_s1 }
   0x6   :  { %p146_p0 = scmp.ne.s32.totalorder %s110_s1, %s145_s25  ;;  %p151_p2 = scmp.lt.s32.totalorder %s145_s25, %s145_s25 }
   0x8   :  { %140 = vmatpush3.bf16.msra.mxu0 %v139_v7  ;;  %p152_p3 = por %p151_p2, %p150_p1 }
   0xa   :  { %p153_p4 = pnand %p152_p3, %p146_p0 }
   0xb   :  { %133 = vmatmul.mubr.msk.f32.vlgmr.msra.gmra.mrb[0].mxu0 %vm27_vm1, %v15_v8 }
  0xde   :  { %v97_v10 = vpop.f32.mrb[0].mxu0 }
  0xdf   :  { %v98_v11 = vadd.f32 %v117_v9, %v97_v10  ;;  %v134_v12 = vpop.f32.mrb[1].mxu0 }
  0xe1   :  { %102 = vst.msk [vmem:[#allocation2] sm:$0xff] %vm101_vm2, %v98_v11 }
  0xe2   :  { %156 = shalt.err (!%p153_p4)
}
  0xe3   :  { %s157_s27 = scalar_lea.hbm %s226_s3, 128 }
  0xe4   :  { %p158_p5 = scmp.ne.s32.totalorder %s226_s3, %s157_s27  ;;  %p161_p6 = scmp.lt.u32.totalorder %s157_s27, %s226_s3 }
  0xe6   :  { %p163_p7 = pnand %p161_p6, %p158_p5 }
  0xe8   :  { %166 = shalt.err (!%p163_p7)
}
  0xe9   :  { %112 = dma.vmem_to_hbm [thread:$0]  %s110_s1, 128, %s226_s3, [#allocation3]  }
  0xea   :  { %167 = dma.done.wait [#allocation3], 128  }
  0xeb   :  { %168 = vsyncadd [#allocation3], 4294967168 }
  0xec   :  { %116 = vsyncpa [#allocation3], 1 }

</bundles_post_ra>
